<compile_context>
chip_gen: v5e
topology: v5e:2x2
jax: 0.10.0
libtpu: 0.0.40
codegen_flags: <defaults>
</compile_context>

<pallas_src>
import jax
import jax.numpy as jnp
import numpy as np
from jax.experimental import pallas as pl
from jax.experimental.pallas import tpu as pltpu

HIDDEN = 256


def _round_up(x, m):
    return ((x + m - 1) // m) * m


def dueling_critic_kernel(
    state_ref, action_ref,
    w1_ref, w2_ref, w3f_ref, w3a_ref,
    w_heads_ref, b123_ref, b_heads_ref,
    out_ref,
):
    f32 = jnp.float32
    bf16 = jnp.bfloat16

    state = state_ref[...].astype(bf16)     # (Bt, S)
    action = action_ref[...].astype(bf16)   # (Bt, A)

    b = b123_ref[...]                        # (3, 256) f32
    b1 = b[0:1, :]
    b2 = b[1:2, :]
    b3 = b[2:3, :]

    # h1 = relu(l1(state))
    h1 = jnp.dot(state, w1_ref[...], preferred_element_type=f32) + b1
    h1 = jnp.maximum(h1, 0.0)
    h1_bf = h1.astype(bf16)

    # feat = relu(l2(h1))
    feat = jnp.dot(h1_bf, w2_ref[...], preferred_element_type=f32) + b2
    feat = jnp.maximum(feat, 0.0)
    feat_bf = feat.astype(bf16)              # cast once, reused twice

    # a_h = relu(l3(concat([feat, action], 1)))  -- split matmul, no concat
    a_pre = (
        jnp.dot(feat_bf, w3f_ref[...], preferred_element_type=f32)
        + jnp.dot(action, w3a_ref[...], preferred_element_type=f32)
        + b3
    )
    a_h = jnp.maximum(a_pre, 0.0)
    a_bf = a_h.astype(bf16)

    # Fused heads: one (2*Bt, 256) @ (256, 2) matmul instead of two N=1 matmuls
    # (head weight pushed to the MXU once; sublane-axis stack is cheap).
    bt = feat.shape[0]
    lhs = jnp.concatenate([feat_bf, a_bf], axis=0)                    # (2*Bt, 256) bf16
    heads = jnp.dot(lhs, w_heads_ref[...], preferred_element_type=f32) + b_heads_ref[...]
    top = heads[:bt, :]     # rows from feat: col 0 = value, col 1 = junk
    bot = heads[bt:, :]     # rows from a_h : col 0 = junk,  col 1 = adv

    # Packed output: col 0 = value, col 1 = adv (pure VPU select, no lane shuffle).
    col = jax.lax.broadcasted_iota(jnp.int32, (bt, 2), 1)
    out_ref[...] = jnp.where(col == 0, top, bot).astype(out_ref.dtype)


def dueling_critic_forward(state, action, params, *, block_b=512):
    """Returns (value, adv, value + adv), each of shape (B, 1) float32."""
    B, state_dim = state.shape
    action_dim = action.shape[1]

    # Batch tile: multiple of 8, at most block_b (sized well inside 32 MiB VMEM).
    bt = min(block_b, _round_up(B, 8))
    B_pad = _round_up(B, bt)
    if B_pad != B:
        pad = B_pad - B
        state = jnp.pad(state, ((0, pad), (0, 0)))
        action = jnp.pad(action, ((0, pad), (0, 0)))

    w1, w2 = params["w1"], params["w2"]
    w3f, w3a = params["w3f"], params["w3a"]
    w_heads, b123, b_heads = params["w_heads"], params["b123"], params["b_heads"]

    grid = (B_pad // bt,)
    # Weights / biases: constant index_map -> fetched once, VMEM-resident across steps.
    const = lambda shape: pl.BlockSpec(shape, lambda i: (0, 0))
    in_specs = [
        pl.BlockSpec((bt, state_dim), lambda i: (i, 0)),    # state
        pl.BlockSpec((bt, action_dim), lambda i: (i, 0)),   # action
        const(w1.shape), const(w2.shape), const(w3f.shape), const(w3a.shape),
        const(w_heads.shape), const(b123.shape), const(b_heads.shape),
    ]
    out_spec = pl.BlockSpec((bt, 2), lambda i: (i, 0))

    out = pl.pallas_call(
        dueling_critic_kernel,
        out_shape=jax.ShapeDtypeStruct((B_pad, 2), jnp.float32),
        grid=grid,
        in_specs=in_specs,
        out_specs=out_spec,
        compiler_params=pltpu.CompilerParams(
            dimension_semantics=("parallel",),
            vmem_limit_bytes=32 * 1024 * 1024,
        ),
    )(state, action, w1, w2, w3f, w3a, w_heads, b123, b_heads)

    out = out[:B]
    value = out[:, 0:1]
    adv = out[:, 1:2]
    # Matches the PyTorch module: q = value + adv (no mean-adv subtraction).
    return value, adv, value + adv


def init_params(key, state_dim, action_dim):
    """Deterministic init mimicking PyTorch nn.Linear default (uniform +-1/sqrt(fan_in)).
    Weights stored as (in_features, out_features); big weights stored in bf16."""
    def linear(key, fan_in, fan_out):
        kw, kb = jax.random.split(key)
        bound = 1.0 / np.sqrt(fan_in)
        w = jax.random.uniform(kw, (fan_in, fan_out), jnp.float32, -bound, bound)
        b = jax.random.uniform(kb, (fan_out,), jnp.float32, -bound, bound)
        return w, b

    k1, k2, kv, k3, ka = jax.random.split(key, 5)
    w1, b1 = linear(k1, state_dim, HIDDEN)
    w2, b2 = linear(k2, HIDDEN, HIDDEN)
    wv, bv = linear(kv, HIDDEN, 1)
    w3, b3 = linear(k3, HIDDEN + action_dim, HIDDEN)
    wa, ba = linear(ka, HIDDEN, 1)

    return {
        "w1": w1.astype(jnp.bfloat16),
        "w2": w2.astype(jnp.bfloat16),
        # split l3 weight: rows [0:256] multiply feat, rows [256:] multiply action
        "w3f": w3[:HIDDEN].astype(jnp.bfloat16),
        "w3a": w3[HIDDEN:].astype(jnp.bfloat16),
        # packed heads: col 0 = lv weight, col 1 = la weight
        "w_heads": jnp.concatenate([wv, wa], axis=1).astype(jnp.bfloat16),  # (256, 2)
        "b123": jnp.stack([b1, b2, b3], axis=0),                            # (3, 256)
        "b_heads": jnp.concatenate([bv, ba], axis=0)[None, :],              # (1, 2)
    }


def reference_forward(state, action, p):
    """Pure-JAX reference using the exact same bf16-weight / f32-accumulate math."""
    f32, bf16 = jnp.float32, jnp.bfloat16
    b1, b2, b3 = p["b123"][0], p["b123"][1], p["b123"][2]
    h1 = jnp.maximum(
        jnp.dot(state.astype(bf16), p["w1"], preferred_element_type=f32) + b1, 0.0)
    feat = jnp.maximum(
        jnp.dot(h1.astype(bf16), p["w2"], preferred_element_type=f32) + b2, 0.0)
    a_h = jnp.maximum(
        jnp.dot(feat.astype(bf16), p["w3f"], preferred_element_type=f32)
        + jnp.dot(action.astype(bf16), p["w3a"], preferred_element_type=f32) + b3, 0.0)
    hv = jnp.dot(feat.astype(bf16), p["w_heads"], preferred_element_type=f32) + p["b_heads"]
    ha = jnp.dot(a_h.astype(bf16), p["w_heads"], preferred_element_type=f32) + p["b_heads"]
    value = hv[:, 0:1]
    adv = ha[:, 1:2]
    return value, adv, value + adv


if __name__ == "__main__":
    state_dim, action_dim, batch = 16, 8, 8
    key = jax.random.PRNGKey(0)
    kp, ks, ka = jax.random.split(key, 3)

    params = init_params(kp, state_dim, action_dim)
    state = jax.random.normal(ks, (batch, state_dim), jnp.float32)
    action = jax.random.normal(ka, (batch, action_dim), jnp.float32)

    value, adv, q = dueling_critic_forward(state, action, params)
    jax.block_until_ready((value, adv, q))

    v_ref, a_ref, q_ref = reference_forward(state, action, params)
    np.testing.assert_allclose(np.asarray(value), np.asarray(v_ref), rtol=1e-3, atol=1e-3)
    np.testing.assert_allclose(np.asarray(adv), np.asarray(a_ref), rtol=1e-3, atol=1e-3)
    np.testing.assert_allclose(np.asarray(q), np.asarray(q_ref), rtol=1e-3, atol=1e-3)

    print("KERNEL_OK")
</pallas_src>

<mosaic_0001>
module attributes {stable_mosaic.version = 11 : i64} {
  func.func @dueling_critic_kernel(%arg0: i32, %arg1: memref<8x16xf32, #tpu.memory_space<vmem>>, %arg2: memref<8x8xf32, #tpu.memory_space<vmem>>, %arg3: memref<16x256xbf16, #tpu.memory_space<vmem>>, %arg4: memref<256x256xbf16, #tpu.memory_space<vmem>>, %arg5: memref<256x256xbf16, #tpu.memory_space<vmem>>, %arg6: memref<8x256xbf16, #tpu.memory_space<vmem>>, %arg7: memref<256x2xbf16, #tpu.memory_space<vmem>>, %arg8: memref<3x256xf32, #tpu.memory_space<vmem>>, %arg9: memref<1x2xf32, #tpu.memory_space<vmem>>, %arg10: memref<8x2xf32, #tpu.memory_space<vmem>>) attributes {dimension_semantics = [#tpu.dimension_semantics<parallel>], iteration_bounds = array<i64: 1>, scalar_prefetch = 0 : i64, scratch_operands = 0 : i64, tpu.core_type = #tpu.core_type<tc>, window_params = [{transform_indices = @transform_0, window_bounds = array<i64: 8, 16>}, {transform_indices = @transform_1, window_bounds = array<i64: 8, 8>}, {pipeline_mode = #tpu.pipeline_mode<synchronous>, transform_indices = @transform_2, window_bounds = array<i64: 16, 256>}, {pipeline_mode = #tpu.pipeline_mode<synchronous>, transform_indices = @transform_3, window_bounds = array<i64: 256, 256>}, {pipeline_mode = #tpu.pipeline_mode<synchronous>, transform_indices = @transform_4, window_bounds = array<i64: 256, 256>}, {pipeline_mode = #tpu.pipeline_mode<synchronous>, transform_indices = @transform_5, window_bounds = array<i64: 8, 256>}, {pipeline_mode = #tpu.pipeline_mode<synchronous>, transform_indices = @transform_6, window_bounds = array<i64: 256, 2>}, {pipeline_mode = #tpu.pipeline_mode<synchronous>, transform_indices = @transform_7, window_bounds = array<i64: 3, 256>}, {pipeline_mode = #tpu.pipeline_mode<synchronous>, transform_indices = @transform_8, window_bounds = array<i64: 1, 2>}, {transform_indices = @transform_9, window_bounds = array<i64: 8, 2>}]} {
    %c0 = arith.constant 0 : index
    %c0_0 = arith.constant 0 : index
    %0 = vector.load %arg1[%c0, %c0_0] : memref<8x16xf32, #tpu.memory_space<vmem>>, vector<8x16xf32>
    %1 = arith.truncf %0 : vector<8x16xf32> to vector<8x16xbf16>
    %c0_1 = arith.constant 0 : index
    %c0_2 = arith.constant 0 : index
    %2 = vector.load %arg2[%c0_1, %c0_2] : memref<8x8xf32, #tpu.memory_space<vmem>>, vector<8x8xf32>
    %3 = arith.truncf %2 : vector<8x8xf32> to vector<8x8xbf16>
    %c0_3 = arith.constant 0 : index
    %c0_4 = arith.constant 0 : index
    %4 = vector.load %arg8[%c0_3, %c0_4] : memref<3x256xf32, #tpu.memory_space<vmem>>, vector<3x256xf32>
    %5 = vector.extract_strided_slice %4 {offsets = [0, 0], sizes = [1, 256], strides = [1, 1]} : vector<3x256xf32> to vector<1x256xf32>
    %6 = vector.extract_strided_slice %4 {offsets = [1, 0], sizes = [1, 256], strides = [1, 1]} : vector<3x256xf32> to vector<1x256xf32>
    %7 = vector.extract_strided_slice %4 {offsets = [2, 0], sizes = [1, 256], strides = [1, 1]} : vector<3x256xf32> to vector<1x256xf32>
    %c0_5 = arith.constant 0 : index
    %c0_6 = arith.constant 0 : index
    %8 = vector.load %arg3[%c0_5, %c0_6] : memref<16x256xbf16, #tpu.memory_space<vmem>>, vector<16x256xbf16>
    %cst = arith.constant dense<0.000000e+00> : vector<8x256xf32>
    %9 = tpu.matmul %1, %8, %cst {dimension_numbers = #tpu.dot_dimension_numbers<[1], [0], [0], [1], [0, 0, 1, 1], [], []>} : vector<8x16xbf16>, vector<16x256xbf16>, vector<8x256xf32> -> vector<8x256xf32>
    %10 = vector.broadcast %5 : vector<1x256xf32> to vector<8x256xf32>
    %11 = arith.addf %9, %10 : vector<8x256xf32>
    %cst_7 = arith.constant 0.000000e+00 : f32
    %12 = vector.broadcast %cst_7 : f32 to vector<8x256xf32>
    %13 = arith.maximumf %11, %12 : vector<8x256xf32>
    %14 = arith.truncf %13 : vector<8x256xf32> to vector<8x256xbf16>
    %c0_8 = arith.constant 0 : index
    %c0_9 = arith.constant 0 : index
    %15 = vector.load %arg4[%c0_8, %c0_9] : memref<256x256xbf16, #tpu.memory_space<vmem>>, vector<256x256xbf16>
    %cst_10 = arith.constant dense<0.000000e+00> : vector<8x256xf32>
    %16 = tpu.matmul %14, %15, %cst_10 {dimension_numbers = #tpu.dot_dimension_numbers<[1], [0], [0], [1], [0, 0, 1, 1], [], []>} : vector<8x256xbf16>, vector<256x256xbf16>, vector<8x256xf32> -> vector<8x256xf32>
    %17 = vector.broadcast %6 : vector<1x256xf32> to vector<8x256xf32>
    %18 = arith.addf %16, %17 : vector<8x256xf32>
    %cst_11 = arith.constant 0.000000e+00 : f32
    %19 = vector.broadcast %cst_11 : f32 to vector<8x256xf32>
    %20 = arith.maximumf %18, %19 : vector<8x256xf32>
    %21 = arith.truncf %20 : vector<8x256xf32> to vector<8x256xbf16>
    %c0_12 = arith.constant 0 : index
    %c0_13 = arith.constant 0 : index
    %22 = vector.load %arg5[%c0_12, %c0_13] : memref<256x256xbf16, #tpu.memory_space<vmem>>, vector<256x256xbf16>
    %cst_14 = arith.constant dense<0.000000e+00> : vector<8x256xf32>
    %23 = tpu.matmul %21, %22, %cst_14 {dimension_numbers = #tpu.dot_dimension_numbers<[1], [0], [0], [1], [0, 0, 1, 1], [], []>} : vector<8x256xbf16>, vector<256x256xbf16>, vector<8x256xf32> -> vector<8x256xf32>
    %c0_15 = arith.constant 0 : index
    %c0_16 = arith.constant 0 : index
    %24 = vector.load %arg6[%c0_15, %c0_16] : memref<8x256xbf16, #tpu.memory_space<vmem>>, vector<8x256xbf16>
    %cst_17 = arith.constant dense<0.000000e+00> : vector<8x256xf32>
    %25 = tpu.matmul %3, %24, %cst_17 {dimension_numbers = #tpu.dot_dimension_numbers<[1], [0], [0], [1], [0, 0, 1, 1], [], []>} : vector<8x8xbf16>, vector<8x256xbf16>, vector<8x256xf32> -> vector<8x256xf32>
    %26 = arith.addf %23, %25 : vector<8x256xf32>
    %27 = vector.broadcast %7 : vector<1x256xf32> to vector<8x256xf32>
    %28 = arith.addf %26, %27 : vector<8x256xf32>
    %cst_18 = arith.constant 0.000000e+00 : f32
    %29 = vector.broadcast %cst_18 : f32 to vector<8x256xf32>
    %30 = arith.maximumf %28, %29 : vector<8x256xf32>
    %31 = arith.truncf %30 : vector<8x256xf32> to vector<8x256xbf16>
    %32 = tpu.concatenate %21, %31 in 0 : vector<8x256xbf16>, vector<8x256xbf16> -> vector<16x256xbf16>
    %c0_19 = arith.constant 0 : index
    %c0_20 = arith.constant 0 : index
    %33 = vector.load %arg7[%c0_19, %c0_20] : memref<256x2xbf16, #tpu.memory_space<vmem>>, vector<256x2xbf16>
    %cst_21 = arith.constant dense<0.000000e+00> : vector<16x2xf32>
    %34 = tpu.matmul %32, %33, %cst_21 {dimension_numbers = #tpu.dot_dimension_numbers<[1], [0], [0], [1], [0, 0, 1, 1], [], []>} : vector<16x256xbf16>, vector<256x2xbf16>, vector<16x2xf32> -> vector<16x2xf32>
    %c0_22 = arith.constant 0 : index
    %c0_23 = arith.constant 0 : index
    %35 = vector.load %arg9[%c0_22, %c0_23] : memref<1x2xf32, #tpu.memory_space<vmem>>, vector<1x2xf32>
    %36 = vector.broadcast %35 : vector<1x2xf32> to vector<16x2xf32>
    %37 = arith.addf %34, %36 : vector<16x2xf32>
    %38 = vector.extract_strided_slice %37 {offsets = [0, 0], sizes = [8, 2], strides = [1, 1]} : vector<16x2xf32> to vector<8x2xf32>
    %39 = vector.extract_strided_slice %37 {offsets = [8, 0], sizes = [8, 2], strides = [1, 1]} : vector<16x2xf32> to vector<8x2xf32>
    %40 = tpu.iota {dimensions = array<i32: 1>} : vector<8x2xi32>
    %c0_i32 = arith.constant 0 : i32
    %41 = vector.broadcast %c0_i32 : i32 to vector<8x2xi32>
    %42 = arith.cmpi eq, %40, %41 : vector<8x2xi32>
    %43 = arith.select %42, %38, %39 : vector<8x2xi1>, vector<8x2xf32>
    %c0_24 = arith.constant 0 : index
    %c0_25 = arith.constant 0 : index
    %44 = vector.load %arg10[%c0_24, %c0_25] : memref<8x2xf32, #tpu.memory_space<vmem>>, vector<8x2xf32>
    tpu.vector_store %arg10[%c0_24, %c0_25], %43 {strides = array<i32>} : memref<8x2xf32, #tpu.memory_space<vmem>>, vector<8x2xf32>,
    return
  }
  func.func @transform_0(%arg0: i32) -> (i32, i32) {
    %c0_i32 = arith.constant 0 : i32
    %c0_i32_0 = arith.constant 0 : i32
    return %arg0, %c0_i32 : i32, i32
  }
  func.func @transform_1(%arg0: i32) -> (i32, i32) {
    %c0_i32 = arith.constant 0 : i32
    %c0_i32_0 = arith.constant 0 : i32
    return %arg0, %c0_i32 : i32, i32
  }
  func.func @transform_2(%arg0: i32) -> (i32, i32) {
    %c0_i32 = arith.constant 0 : i32
    %c0_i32_0 = arith.constant 0 : i32
    %c0_i32_1 = arith.constant 0 : i32
    return %c0_i32, %c0_i32_0 : i32, i32
  }
  func.func @transform_3(%arg0: i32) -> (i32, i32) {
    %c0_i32 = arith.constant 0 : i32
    %c0_i32_0 = arith.constant 0 : i32
    %c0_i32_1 = arith.constant 0 : i32
    return %c0_i32, %c0_i32_0 : i32, i32
  }
  func.func @transform_4(%arg0: i32) -> (i32, i32) {
    %c0_i32 = arith.constant 0 : i32
    %c0_i32_0 = arith.constant 0 : i32
    %c0_i32_1 = arith.constant 0 : i32
    return %c0_i32, %c0_i32_0 : i32, i32
  }
  func.func @transform_5(%arg0: i32) -> (i32, i32) {
    %c0_i32 = arith.constant 0 : i32
    %c0_i32_0 = arith.constant 0 : i32
    %c0_i32_1 = arith.constant 0 : i32
    return %c0_i32, %c0_i32_0 : i32, i32
  }
  func.func @transform_6(%arg0: i32) -> (i32, i32) {
    %c0_i32 = arith.constant 0 : i32
    %c0_i32_0 = arith.constant 0 : i32
    %c0_i32_1 = arith.constant 0 : i32
    return %c0_i32, %c0_i32_0 : i32, i32
  }
  func.func @transform_7(%arg0: i32) -> (i32, i32) {
    %c0_i32 = arith.constant 0 : i32
    %c0_i32_0 = arith.constant 0 : i32
    %c0_i32_1 = arith.constant 0 : i32
    return %c0_i32, %c0_i32_0 : i32, i32
  }
  func.func @transform_8(%arg0: i32) -> (i32, i32) {
    %c0_i32 = arith.constant 0 : i32
    %c0_i32_0 = arith.constant 0 : i32
    %c0_i32_1 = arith.constant 0 : i32
    return %c0_i32, %c0_i32_0 : i32, i32
  }
  func.func @transform_9(%arg0: i32) -> (i32, i32) {
    %c0_i32 = arith.constant 0 : i32
    %c0_i32_0 = arith.constant 0 : i32
    return %arg0, %c0_i32 : i32, i32
  }
}

</mosaic_0001>

<bundles_post_ra>
// kernel: tpu_custom_call.1
= control target key start
LH: loop header
LB: loop body
LE: loop exit
PB: predicated region body
PF: predicated region fallthrough
CT: control target
= control target key end

     0   :  { %14 = vsyncpa [#allocation3], 0  ;;  %s1489_s0 = inlined_call_operand.vmem [shape: f32[8,16], index: 0, kind: input, shape index: {}]   ;;  %s1490_s1 = inlined_call_operand.vmem [shape: f32[8,8], index: 1, kind: input, shape index: {}]   ;;  %s1491_s2 = inlined_call_operand.vmem [shape: bf16[16,256], index: 2, kind: input, shape index: {}]   ;;  %s1492_s3 = inlined_call_operand.hbm [shape: bf16[256,256], index: 3, kind: input, shape index: {}]   ;;  %s1493_s4 = inlined_call_operand.hbm [shape: bf16[256,256], index: 4, kind: input, shape index: {}]   ;;  %s1494_s5 = inlined_call_operand.vmem [shape: bf16[8,256], index: 5, kind: input, shape index: {}]   ;;  %s1495_s6 = inlined_call_operand.vmem [shape: bf16[256,2], index: 6, kind: input, shape index: {}]   ;;  %s1496_s7 = inlined_call_operand.vmem [shape: f32[3,256], index: 7, kind: input, shape index: {}]   ;;  %s1497_s8 = inlined_call_operand.vmem [shape: f32[1,2], index: 8, kind: input, shape index: {}]   ;;  %s1498_s9 = inlined_call_operand.vmem [shape: f32[8,2], index: 9, kind: output, shape index: {}]  }
   0x1   :  { %s26_s11 = sshll.u32 %s1492_s3, 4  ;;  %s27_s11 = int_to_ptr.hbm [resolvable:$true] %s26_s11 }
   0x2   :  { %15 = vsyncpa [#allocation5], 0  ;;  %s1337_s12 = smov [#allocation2]   ;;  %s39_s16 = sshll.u32 %s1493_s4, 4  ;;  %s40_s16 = int_to_ptr.hbm [resolvable:$true] %s39_s16 }
   0x3   :  { %s28_s13 = sshll.u32 %s1337_s12, 4  ;;  %s1338_s17 = smov 128   ;;  %s29_s13 = int_to_ptr.vmem [resolvable:$true] %s28_s13 }
   0x4   :  { %s1339_s18 = smov 8   ;;  %s1340_s19 = smov [#allocation4]  }
   0x5   :  { %34 = dma.hbm_to_vmem [thread:$0]  %s27_s11, 4096, %s29_s13, [#allocation3], %s1338_s17, %s1338_s17, %s1339_s18  }
   0x6   :  { %s41_s20 = sshll.u32 %s1340_s19, 4  ;;  %s42_s20 = int_to_ptr.vmem [resolvable:$true] %s41_s20 }
   0x7   :  { %47 = dma.hbm_to_vmem [thread:$0]  %s40_s16, 4096, %s42_s20, [#allocation5], %s1338_s17, %s1338_s17, %s1339_s18  }
   0x8   :  { %1333 = dma.done.wait [#allocation3], 4096  }
   0x9   :  { %1334 = vsyncadd [#allocation3], 4294963200 }
   0xa   :  { %1335 = dma.done.wait [#allocation5], 4096  }
   0xb   :  { %1336 = vsyncadd [#allocation5], 4294963200  ;;  %v868_v0 = vld [vmem:[%s1491_s2] sm:$0xf]  ;;  %v1199_v1 = vld [vmem:[%s1491_s2 + $0x4] sm:$0xf0] }
   0xc   :  { %v1198_v2 = vld [vmem:[%s1491_s2 + $0x4] sm:$0xf]  ;;  %v869_v3 = vor.u32 %v1199_v1, %v868_v0  ;;  %v870_v4 = vld [vmem:[%s1491_s2 + $0x8] sm:$0xf0]  ;;  %vm89_vm0 = vcmask 130048   ;;  %vm418_vm1 = vcmask 1043456  }
   0xd   :  { %v65_v5 = vld [vmem:[%s1489_s0] sm:$0xff]  ;;  %v934_v6 = vld [vmem:[#allocation2 + $0x70] sm:$0xf]  ;;  %v873_v7 = vor.u32 %v1198_v2, %v870_v4  ;;  %v1215_v9 = vld [vmem:[#allocation2 + $0x74] sm:$0xf0]  ;;  %vm414_vm2 = vcmask 64512  }
   0xe   :  { %v66_v8 = vpack.c.bf16 %v65_v5, %v65_v5  ;;  %v998_v10 = vld [vmem:[#allocation2 + $0xf0] sm:$0xf]  ;;  %v1231_v11 = vld [vmem:[#allocation2 + $0xf4] sm:$0xf0]  ;;  %100 = vmatpush.bf16.msra.mxu2 %v869_v3  ;;  %v935_v12 = vor.u32 %v1215_v9, %v934_v6  ;;  %v1214_v14 = vld [vmem:[#allocation2 + $0x74] sm:$0xf] }
   0xf   :  { %v999_v13 = vor.u32 %v1231_v11, %v998_v10  ;;  %v936_v15 = vld [vmem:[#allocation2 + $0x78] sm:$0xf0]  ;;  %v1230_v16 = vld [vmem:[#allocation2 + $0xf4] sm:$0xf]  ;;  %113 = vmatpush.bf16.msra.mxu3 %v873_v7  ;;  %v926_v19 = vld [vmem:[#allocation2 + $0x60] sm:$0xf] }
  0x10   :  { %v939_v17 = vor.u32 %v1214_v14, %v936_v15  ;;  %v1000_v18 = vld [vmem:[#allocation2 + $0xf8] sm:$0xf0]  ;;  %v1213_v20 = vld [vmem:[#allocation2 + $0x64] sm:$0xf0]  ;;  %v990_v23 = vld [vmem:[#allocation2 + $0xe0] sm:$0xf] }
  0x11   :  { %v1003_v21 = vor.u32 %v1230_v16, %v1000_v18  ;;  %v927_v22 = vor.u32 %v1213_v20, %v926_v19  ;;  %v1229_v24 = vld [vmem:[#allocation2 + $0xe4] sm:$0xf0]  ;;  %v1212_v25 = vld [vmem:[#allocation2 + $0x64] sm:$0xf]  ;;  %874 = vmatmul.msk.bf16.vlgmr.msra.gmra.mxu2 %vm89_vm0, %v66_v8  ;;  %v928_v27 = vld [vmem:[#allocation2 + $0x68] sm:$0xf0] }
  0x12   :  { %321 = vmatpush.bf16.msrb.mxu2 %v935_v12  ;;  %347 = vmatpush.bf16.msra.mxu0 %v939_v17  ;;  %v991_v26 = vor.u32 %v1229_v24, %v990_v23  ;;  %v1228_v28 = vld [vmem:[#allocation2 + $0xe4] sm:$0xf]  ;;  %v992_v29 = vld [vmem:[#allocation2 + $0xe8] sm:$0xf0]  ;;  %v931_v30 = vor.u32 %v1212_v25, %v928_v27  ;;  %v918_v32 = vld [vmem:[#allocation2 + $0x50] sm:$0xf] }
  0x13   :  { %334 = vmatpush.bf16.msrb.mxu3 %v999_v13  ;;  %360 = vmatpush.bf16.msra.mxu1 %v1003_v21  ;;  %v995_v31 = vor.u32 %v1228_v28, %v992_v29  ;;  %v1211_v33 = vld [vmem:[#allocation2 + $0x54] sm:$0xf0]  ;;  %v982_v34 = vld [vmem:[#allocation2 + $0xd0] sm:$0xf]  ;;  %v1210_v36 = vld [vmem:[#allocation2 + $0x54] sm:$0xf] }
  0x14   :  { %875 = vmatmul.msk.bf16.vlgmr.msra.gmra.mxu3 %vm89_vm0, %v66_v8  ;;  %v1227_v35 = vld [vmem:[#allocation2 + $0xd4] sm:$0xf0]  ;;  %v920_v37 = vld [vmem:[#allocation2 + $0x58] sm:$0xf0]  ;;  %v919_v38 = vor.u32 %v1211_v33, %v918_v32  ;;  %v1226_v40 = vld [vmem:[#allocation2 + $0xd4] sm:$0xf] }
  0x15   :  { %v983_v39 = vor.u32 %v1227_v35, %v982_v34  ;;  %v984_v41 = vld [vmem:[#allocation2 + $0xd8] sm:$0xf0]  ;;  %v910_v42 = vld [vmem:[#allocation2 + $0x40] sm:$0xf]  ;;  %v923_v43 = vor.u32 %v1210_v36, %v920_v37  ;;  %v1209_v44 = vld [vmem:[#allocation2 + $0x44] sm:$0xf0] }
  0x16   :  { %322 = vmatpush.bf16.msrb.mxu2 %v927_v22  ;;  %348 = vmatpush.bf16.msra.mxu0 %v931_v30  ;;  %v974_v45 = vld [vmem:[#allocation2 + $0xc0] sm:$0xf]  ;;  %v1225_v46 = vld [vmem:[#allocation2 + $0xc4] sm:$0xf0]  ;;  %v987_v47 = vor.u32 %v1226_v40, %v984_v41  ;;  %v1208_v48 = vld [vmem:[#allocation2 + $0x44] sm:$0xf]  ;;  %v911_v52 = vor.u32 %v1209_v44, %v910_v42 }
  0x17   :  { %335 = vmatpush.bf16.msrb.mxu3 %v991_v26  ;;  %361 = vmatpush.bf16.msra.mxu1 %v995_v31  ;;  %v912_v49 = vld [vmem:[#allocation2 + $0x48] sm:$0xf0]  ;;  %v1224_v50 = vld [vmem:[#allocation2 + $0xc4] sm:$0xf]  ;;  %v975_v53 = vor.u32 %v1225_v46, %v974_v45  ;;  %v902_v54 = vld [vmem:[#allocation2 + $0x30] sm:$0xf] }
  0x18   :  { %v976_v51 = vld [vmem:[#allocation2 + $0xc8] sm:$0xf0]  ;;  %v915_v55 = vor.u32 %v1208_v48, %v912_v49  ;;  %v1207_v56 = vld [vmem:[#allocation2 + $0x34] sm:$0xf0]  ;;  %v966_v57 = vld [vmem:[#allocation2 + $0xb0] sm:$0xf] }
  0x19   :  { %v1223_v58 = vld [vmem:[#allocation2 + $0xb4] sm:$0xf0]  ;;  %v979_v59 = vor.u32 %v1224_v50, %v976_v51  ;;  %v1206_v60 = vld [vmem:[#allocation2 + $0x34] sm:$0xf]  ;;  %v904_v61 = vld [vmem:[#allocation2 + $0x38] sm:$0xf0]  ;;  %v903_v0 = vor.u32 %v1207_v56, %v902_v54 }
  0x1a   :  { %323 = vmatpush.bf16.msrb.mxu2 %v919_v38  ;;  %349 = vmatpush.bf16.msra.mxu0 %v923_v43  ;;  %v1222_v62 = vld [vmem:[#allocation2 + $0xb4] sm:$0xf]  ;;  %v968_v63 = vld [vmem:[#allocation2 + $0xb8] sm:$0xf0]  ;;  %v967_v1 = vor.u32 %v1223_v58, %v966_v57  ;;  %v894_v2 = vld [vmem:[#allocation2 + $0x20] sm:$0xf]  ;;  %v907_v4 = vor.u32 %v1206_v60, %v904_v61 }
  0x1b   :  { %336 = vmatpush.bf16.msrb.mxu3 %v983_v39  ;;  %362 = vmatpush.bf16.msra.mxu1 %v987_v47  ;;  %v1205_v3 = vld [vmem:[#allocation2 + $0x24] sm:$0xf0]  ;;  %v958_v5 = vld [vmem:[#allocation2 + $0xa0] sm:$0xf]  ;;  %v971_v7 = vor.u32 %v1222_v62, %v968_v63  ;;  %v1204_v8 = vld [vmem:[#allocation2 + $0x24] sm:$0xf] }
  0x1c   :  { %v1221_v6 = vld [vmem:[#allocation2 + $0xa4] sm:$0xf0]  ;;  %v896_v9 = vld [vmem:[#allocation2 + $0x28] sm:$0xf0]  ;;  %v1220_v10 = vld [vmem:[#allocation2 + $0xa4] sm:$0xf]  ;;  %v895_v12 = vor.u32 %v1205_v3, %v894_v2 }
  0x1d   :  { %v960_v11 = vld [vmem:[#allocation2 + $0xa8] sm:$0xf0]  ;;  %v959_v13 = vor.u32 %v1221_v6, %v958_v5  ;;  %v899_v14 = vor.u32 %v1204_v8, %v896_v9  ;;  %v886_v16 = vld [vmem:[#allocation2 + $0x10] sm:$0xf]  ;;  %v1203_v17 = vld [vmem:[#allocation2 + $0x14] sm:$0xf0] }
  0x1e   :  { %324 = vmatpush.bf16.msrb.mxu2 %v911_v52  ;;  %350 = vmatpush.bf16.msra.mxu0 %v915_v55  ;;  %v963_v15 = vor.u32 %v1220_v10, %v960_v11  ;;  %v887_v18 = vor.u32 %v1203_v17, %v886_v16  ;;  %v950_v19 = vld [vmem:[#allocation2 + $0x90] sm:$0xf]  ;;  %v1219_v20 = vld [vmem:[#allocation2 + $0x94] sm:$0xf0]  ;;  %v1202_v21 = vld [vmem:[#allocation2 + $0x14] sm:$0xf] }
  0x1f   :  { %337 = vmatpush.bf16.msrb.mxu3 %v975_v53  ;;  %363 = vmatpush.bf16.msra.mxu1 %v979_v59  ;;  %v951_v22 = vor.u32 %v1219_v20, %v950_v19  ;;  %v888_v23 = vld [vmem:[#allocation2 + $0x18] sm:$0xf0]  ;;  %v1218_v24 = vld [vmem:[#allocation2 + $0x94] sm:$0xf]  ;;  %v878_v28 = vld [vmem:[#allocation2] sm:$0xf] }
  0x20   :  { %v891_v25 = vor.u32 %v1202_v21, %v888_v23  ;;  %v952_v26 = vld [vmem:[#allocation2 + $0x98] sm:$0xf0]  ;;  %v1201_v29 = vld [vmem:[#allocation2 + $0x4] sm:$0xf0]  ;;  %v942_v30 = vld [vmem:[#allocation2 + $0x80] sm:$0xf] }
  0x21   :  { %v955_v27 = vor.u32 %v1218_v24, %v952_v26  ;;  %v879_v31 = vor.u32 %v1201_v29, %v878_v28  ;;  %v1217_v32 = vld [vmem:[#allocation2 + $0x84] sm:$0xf0]  ;;  %v1200_v33 = vld [vmem:[#allocation2 + $0x4] sm:$0xf]  ;;  %v880_v34 = vld [vmem:[#allocation2 + $0x8] sm:$0xf0] }
  0x22   :  { %325 = vmatpush.bf16.msrb.mxu2 %v903_v0  ;;  %351 = vmatpush.bf16.msra.mxu0 %v907_v4  ;;  %v943_v35 = vor.u32 %v1217_v32, %v942_v30  ;;  %v883_v36 = vor.u32 %v1200_v33, %v880_v34  ;;  %v1216_v37 = vld [vmem:[#allocation2 + $0x84] sm:$0xf]  ;;  %v944_v38 = vld [vmem:[#allocation2 + $0x88] sm:$0xf0]  ;;  %v1064_v41 = vld [vmem:[#allocation4 + $0x70] sm:$0xf] }
  0x23   :  { %338 = vmatpush.bf16.msrb.mxu3 %v967_v1  ;;  %364 = vmatpush.bf16.msra.mxu1 %v971_v7  ;;  %v947_v39 = vor.u32 %v1216_v37, %v944_v38  ;;  %v408_v40 = vld [vmem:[%s1494_s5] sm:$0xff]  ;;  %v1247_v42 = vld [vmem:[#allocation4 + $0x74] sm:$0xf0]  ;;  %v1128_v46 = vld [vmem:[#allocation4 + $0xf0] sm:$0xf]  ;;  %vm858_vm4 = vcmask 15360  }
  0x24   :  { %v410_v43 = vunpack.c.l.b16 %v408_v40  ;;  %v411_v44 = vunpack.c.h.b16 %v408_v40  ;;  %v1065_v45 = vor.u32 %v1247_v42, %v1064_v41  ;;  %v1263_v47 = vld [vmem:[#allocation4 + $0xf4] sm:$0xf0]  ;;  %v1056_v51 = vld [vmem:[#allocation4 + $0x60] sm:$0xf]  ;;  %v1245_v52 = vld [vmem:[#allocation4 + $0x64] sm:$0xf0] }
  0x25   :  { %v1129_v48 = vor.u32 %v1263_v47, %v1128_v46  ;;  %v1120_v53 = vld [vmem:[#allocation4 + $0xe0] sm:$0xf]  ;;  %v1057_v54 = vor.u32 %v1245_v52, %v1056_v51  ;;  %v1261_v55 = vld [vmem:[#allocation4 + $0xe4] sm:$0xf0]  ;;  %v1048_v60 = vld [vmem:[#allocation4 + $0x50] sm:$0xf] }
  0x26   :  { %326 = vmatpush.bf16.msrb.mxu2 %v895_v12  ;;  %352 = vmatpush.bf16.msra.mxu0 %v899_v14  ;;  %v412_v49 = vpack.c.b16 %v410_v43, %v410_v43  ;;  %v413_v50 = vpack.c.b16 %v411_v44, %v411_v44  ;;  %v1121_v58 = vor.u32 %v1261_v55, %v1120_v53  ;;  %v1422_v59 = vld [vmem:[%s1496_s7] sm:$0x77]  ;;  %v1243_v61 = vld [vmem:[#allocation4 + $0x54] sm:$0xf0]  ;;  %v1112_v62 = vld [vmem:[#allocation4 + $0xd0] sm:$0xf] }
  0x27   :  { %339 = vmatpush.bf16.msrb.mxu3 %v959_v13  ;;  %365 = vmatpush.bf16.msra.mxu1 %v963_v15  ;;  %v1049_v63 = vor.u32 %v1243_v61, %v1048_v60  ;;  %v1259_v0 = vld [vmem:[#allocation4 + $0xd4] sm:$0xf0]  ;;  %v73_v1 = vperm.slane %v1422_v59, 0  ;;  %v74_v3 = vperm.slane %v1422_v59, 4  ;;  %v1246_v9 = vld [vmem:[#allocation4 + $0x74] sm:$0xf] }
  0x28   :  { %v420_v56 = vsel %vm418_vm1, %v412_v49, 0  ;;  %v423_v57 = vsel %vm418_vm1, %v413_v50, 0  ;;  %v1113_v2 = vor.u32 %v1259_v0, %v1112_v62  ;;  %v1066_v11 = vld [vmem:[#allocation4 + $0x78] sm:$0xf0]  ;;  %v1262_v12 = vld [vmem:[#allocation4 + $0xf4] sm:$0xf] }
  0x29   :  { %v77_v4 = vperm.slane %v73_v1, 0  ;;  %v78_v5 = vperm.slane %v74_v3, 0  ;;  %v1130_v13 = vld [vmem:[#allocation4 + $0xf8] sm:$0xf0]  ;;  %v1069_v17 = vor.u32 %v1246_v9, %v1066_v11  ;;  %v1244_v19 = vld [vmem:[#allocation4 + $0x64] sm:$0xf] }
  0x2a   :  { %327 = vmatpush.bf16.msrb.mxu2 %v887_v18  ;;  %353 = vmatpush.bf16.msra.mxu0 %v891_v25  ;;  %v1133_v18 = vor.u32 %v1262_v12, %v1130_v13  ;;  %v1058_v21 = vld [vmem:[#allocation4 + $0x68] sm:$0xf0]  ;;  %v1242_v28 = vld [vmem:[#allocation4 + $0x54] sm:$0xf]  ;;  %v1050_v29 = vld [vmem:[#allocation4 + $0x58] sm:$0xf0] }
  0x2b   :  { %340 = vmatpush.bf16.msrb.mxu3 %v951_v22  ;;  %366 = vmatpush.bf16.msra.mxu1 %v955_v27  ;;  %v1260_v22 = vld [vmem:[#allocation4 + $0xe4] sm:$0xf]  ;;  %v1122_v23 = vld [vmem:[#allocation4 + $0xe8] sm:$0xf0]  ;;  %v1061_v26 = vor.u32 %v1244_v19, %v1058_v21  ;;  %v1258_v30 = vld [vmem:[#allocation4 + $0xd4] sm:$0xf]  ;;  %v1053_v32 = vor.u32 %v1242_v28, %v1050_v29 }
  0x2c   :  { %v1125_v27 = vor.u32 %v1260_v22, %v1122_v23  ;;  %v67_v34 = vld [vmem:[%s1490_s1] sm:$0xff]  ;;  %v1241_v37 = vld [vmem:[#allocation4 + $0x44] sm:$0xf0]  ;;  %v1042_v42 = vld [vmem:[#allocation4 + $0x48] sm:$0xf0] }
  0x2d   :  { %v1104_v38 = vld [vmem:[#allocation4 + $0xc0] sm:$0xf]  ;;  %v1257_v40 = vld [vmem:[#allocation4 + $0xc4] sm:$0xf0]  ;;  %v1240_v41 = vld [vmem:[#allocation4 + $0x44] sm:$0xf] }
  0x2e   :  { %328 = vmatpush.bf16.msrb.mxu2 %v879_v31  ;;  %354 = vmatpush.bf16.msra.mxu0 %v883_v36  ;;  %v1114_v31 = vld [vmem:[#allocation4 + $0xd8] sm:$0xf0]  ;;  %v1040_v36 = vld [vmem:[#allocation4 + $0x40] sm:$0xf]  ;;  %v1105_v43 = vor.u32 %v1257_v40, %v1104_v38  ;;  %v1045_v44 = vor.u32 %v1240_v41, %v1042_v42  ;;  %v1106_v46 = vld [vmem:[#allocation4 + $0xc8] sm:$0xf0] }
  0x2f   :  { %341 = vmatpush.bf16.msrb.mxu3 %v943_v35  ;;  %367 = vmatpush.bf16.msra.mxu1 %v947_v39  ;;  %v1117_v33 = vor.u32 %v1258_v30, %v1114_v31  ;;  %v68_v35 = vpack.c.bf16 %v67_v34, %v67_v34  ;;  %v1041_v39 = vor.u32 %v1241_v37, %v1040_v36  ;;  %v1239_v49 = vld [vmem:[#allocation4 + $0x34] sm:$0xf0]  ;;  %v1096_v50 = vld [vmem:[#allocation4 + $0xb0] sm:$0xf]  ;;  %v1238_v53 = vld [vmem:[#allocation4 + $0x34] sm:$0xf] }
  0x30   :  { %v1255_v52 = vld [vmem:[#allocation4 + $0xb4] sm:$0xf0]  ;;  %v1024_v61 = vld [vmem:[#allocation4 + $0x20] sm:$0xf]  ;;  %v1237_v62 = vld [vmem:[#allocation4 + $0x24] sm:$0xf0] }
  0x31   :  { %v1097_v55 = vor.u32 %v1255_v52, %v1096_v50  ;;  %v1088_v0 = vld [vmem:[#allocation4 + $0xa0] sm:$0xf]  ;;  %v1253_v1 = vld [vmem:[#allocation4 + $0xa4] sm:$0xf0]  ;;  %v1016_v9 = vld [vmem:[#allocation4 + $0x10] sm:$0xf] }
  0x32   :  { %618 = vmatpush.bf16.msrb.mxu0 %v1065_v45  ;;  %432 = vmatpush.bf16.msra.mxu2 %v420_v56  ;;  %v1256_v45 = vld [vmem:[#allocation4 + $0xc4] sm:$0xf]  ;;  %v1089_v3 = vor.u32 %v1253_v1, %v1088_v0  ;;  %v1080_v11 = vld [vmem:[#allocation4 + $0x90] sm:$0xf]  ;;  %v1251_v13 = vld [vmem:[#allocation4 + $0x94] sm:$0xf0] }
  0x33   :  { %631 = vmatpush.bf16.msrb.mxu1 %v1129_v48  ;;  %445 = vmatpush.bf16.msra.mxu3 %v423_v57  ;;  %v1109_v47 = vor.u32 %v1256_v45, %v1106_v46  ;;  %v1032_v48 = vld [vmem:[#allocation4 + $0x30] sm:$0xf]  ;;  %v1254_v57 = vld [vmem:[#allocation4 + $0xb4] sm:$0xf]  ;;  %v1082_v19 = vld [vmem:[#allocation4 + $0x98] sm:$0xf0] }
  0x34   :  { %v1033_v51 = vor.u32 %v1239_v49, %v1032_v48  ;;  %v1008_v21 = vld [vmem:[#allocation4] sm:$0xf]  ;;  %v1233_v22 = vld [vmem:[#allocation4 + $0x4] sm:$0xf0]  ;;  %v1248_v30 = vld [vmem:[#allocation4 + $0x84] sm:$0xf] }
  0x35   :  { %v1072_v23 = vld [vmem:[#allocation4 + $0x80] sm:$0xf]  ;;  %v1074_v31 = vld [vmem:[#allocation4 + $0x88] sm:$0xf0]  ;;  %v1271_v34 = vld [vmem:[%s1495_s6 + $0x38] sm:$0xff]  ;;  %v155_v37 = vperm.slane %v1422_v59, 1 }
  0x36   :  { %619 = vmatpush.bf16.msrb.mxu0 %v1057_v54  ;;  %v1034_v54 = vld [vmem:[#allocation4 + $0x38] sm:$0xf0]  ;;  %v1278_v40 = vld [vmem:[%s1495_s6 + $0x70] sm:$0xff]  ;;  %v1277_v45 = vld [vmem:[%s1495_s6 + $0x68] sm:$0xff] }
  0x37   :  { %632 = vmatpush.bf16.msrb.mxu1 %v1121_v58  ;;  %v1037_v56 = vor.u32 %v1238_v53, %v1034_v54  ;;  %v1098_v58 = vld [vmem:[#allocation4 + $0xb8] sm:$0xf0] }
  0x38   :  { %v1101_v60 = vor.u32 %v1254_v57, %v1098_v58 }
  0x3a   :  { %620 = vmatpush.bf16.msrb.mxu0 %v1049_v63  ;;  %v1025_v63 = vor.u32 %v1237_v62, %v1024_v61 }
  0x3b   :  { %633 = vmatpush.bf16.msrb.mxu1 %v1113_v2  ;;  %v1236_v2 = vld [vmem:[#allocation4 + $0x24] sm:$0xf] }
  0x3e   :  { %621 = vmatpush.bf16.msrb.mxu0 %v1041_v39  ;;  %v1270_v39 = vld [vmem:[%s1495_s6 + $0x30] sm:$0xff] }
  0x3f   :  { %634 = vmatpush.bf16.msrb.mxu1 %v1105_v43  ;;  %v159_v43 = vperm.slane %v155_v37, 1 }
  0x42   :  { %622 = vmatpush.bf16.msrb.mxu0 %v1033_v51 }
  0x43   :  { %635 = vmatpush.bf16.msrb.mxu1 %v1097_v55 }
  0x46   :  { %623 = vmatpush.bf16.msrb.mxu0 %v1025_v63 }
  0x47   :  { %636 = vmatpush.bf16.msrb.mxu1 %v1089_v3  ;;  %v1268_v3 = vld [vmem:[%s1495_s6 + $0x20] sm:$0xff] }
  0x94   :  { %v102_v6 = vpop.f32.mrf.mxu2 }
  0x95   :  { %v103_v7 = vadd.f32 %v102_v6, %v77_v4  ;;  %v1026_v4 = vld [vmem:[#allocation4 + $0x28] sm:$0xf0] }
  0x96   :  { %v1090_v6 = vld [vmem:[#allocation4 + $0xa8] sm:$0xf0] }
  0x97   :  { %v115_v8 = vpop.f32.mrf.mxu3  ;;  %v119_v14 = vmax.f32 %v103_v7, 0.0  ;;  %v1029_v7 = vor.u32 %v1236_v2, %v1026_v4  ;;  %v1276_v4 = vld [vmem:[%s1495_s6 + $0x60] sm:$0xff] }
  0x98   :  { %v116_v10 = vadd.f32 %v115_v8, %v78_v5  ;;  %v1252_v5 = vld [vmem:[#allocation4 + $0xa4] sm:$0xf] }
  0x99   :  { %v121_v16 = vpack.c.bf16 %v119_v14, %v119_v14  ;;  %v1093_v8 = vor.u32 %v1252_v5, %v1090_v6  ;;  %v1234_v14 = vld [vmem:[#allocation4 + $0x14] sm:$0xf]  ;;  %v1267_v5 = vld [vmem:[%s1495_s6 + $0x18] sm:$0xff] }
  0x9a   :  { %v120_v15 = vmax.f32 %v116_v10, 0.0  ;;  %v1235_v10 = vld [vmem:[#allocation4 + $0x14] sm:$0xf0] }
  0x9b   :  { %329 = vmatmul.bf16.vlgmr.msrb.gmra.mxu2 %v121_v16  ;;  %355 = vmatmul.bf16.vlgmr.msra.gmra.mxu0 %v121_v16  ;;  %v1017_v12 = vor.u32 %v1235_v10, %v1016_v9  ;;  %v1081_v16 = vor.u32 %v1251_v13, %v1080_v11  ;;  %v1275_v6 = vld [vmem:[%s1495_s6 + $0x58] sm:$0xff]  ;;  %v1265_v9 = vld [vmem:[%s1495_s6 + $0x8] sm:$0xff]  ;;  %v1264_v11 = vld [vmem:[%s1495_s6] sm:$0xff] }
  0x9c   :  { %v122_v20 = vpack.c.bf16 %v120_v15, %v120_v15  ;;  %v104_v24 = vpop.f32.mrf.mxu2  ;;  %644 = vmatpush.bf16.msrb.mxu2 %v1069_v17  ;;  %v1018_v15 = vld [vmem:[#allocation4 + $0x18] sm:$0xf0]  ;;  %v1273_v10 = vld [vmem:[%s1495_s6 + $0x48] sm:$0xff] }
  0x9d   :  { %v1021_v17 = vor.u32 %v1234_v14, %v1018_v15  ;;  %624 = vmatpush.bf16.msrb.mxu0 %v1017_v12  ;;  %637 = vmatpush.bf16.msrb.mxu1 %v1081_v16  ;;  %v1009_v24 = vor.u32 %v1233_v22, %v1008_v21  ;;  %v1272_v12 = vld [vmem:[%s1495_s6 + $0x40] sm:$0xff]  ;;  %v670_v16 = vperm.slane %v1422_v59, 2 }
  0x9e   :  { %342 = vmatmul.bf16.vlgmr.msrb.gmra.mxu3 %v122_v20  ;;  %368 = vmatmul.bf16.vlgmr.msra.gmra.mxu1 %v122_v20 }
  0x9f   :  { %v117_v25 = vpop.f32.mrf.mxu3  ;;  %657 = vmatpush.bf16.msrb.mxu3 %v1133_v18  ;;  %v1250_v18 = vld [vmem:[#allocation4 + $0x94] sm:$0xf] }
  0xa0   :  { %645 = vmatpush.bf16.msrb.mxu2 %v1061_v26  ;;  %v1085_v20 = vor.u32 %v1250_v18, %v1082_v19  ;;  %v1249_v25 = vld [vmem:[#allocation4 + $0x84] sm:$0xf0]  ;;  %v1232_v26 = vld [vmem:[#allocation4 + $0x4] sm:$0xf]  ;;  %v674_v19 = vperm.slane %v670_v16, 2 }
  0xa1   :  { %v1073_v28 = vor.u32 %v1249_v25, %v1072_v23  ;;  %625 = vmatpush.bf16.msrb.mxu0 %v1009_v24 }
  0xa3   :  { %658 = vmatpush.bf16.msrb.mxu3 %v1125_v27  ;;  %v1010_v27 = vld [vmem:[#allocation4 + $0x8] sm:$0xf0]  ;;  %638 = vmatpush.bf16.msrb.mxu1 %v1073_v28 }
  0xa4   :  { %646 = vmatpush.bf16.msrb.mxu2 %v1053_v32  ;;  %v1013_v29 = vor.u32 %v1232_v26, %v1010_v27  ;;  %v1077_v32 = vor.u32 %v1248_v30, %v1074_v31 }
  0xa5   :  { %826 = vmatpush.bf16.msra.mxu0 %v1271_v34 }
  0xa7   :  { %659 = vmatpush.bf16.msrb.mxu3 %v1117_v33  ;;  %v156_v33 = vperm.slane %v1422_v59, 5 }
  0xa8   :  { %647 = vmatpush.bf16.msrb.mxu2 %v1045_v44  ;;  %v1269_v44 = vld [vmem:[%s1495_s6 + $0x28] sm:$0xff] }
  0xa9   :  { %v160_v36 = vperm.slane %v156_v33, 1  ;;  %827 = vmatpush.bf16.msra.mxu0 %v1270_v39 }
  0xab   :  { %1004 = vmatmul.msk.bf16.vlgmr.msra.gmra.mxu2 %vm414_vm2, %v68_v35  ;;  %660 = vmatpush.bf16.msrb.mxu3 %v1109_v47 }
  0xac   :  { %648 = vmatpush.bf16.msrb.mxu2 %v1037_v56 }
  0xad   :  { %828 = vmatpush.bf16.msra.mxu0 %v1269_v44 }
  0xae   :  { %1005 = vmatmul.msk.bf16.vlgmr.msra.gmra.mxu3 %vm414_vm2, %v68_v35  ;;  %v1279_v35 = vld [vmem:[%s1495_s6 + $0x78] sm:$0xff] }
  0xaf   :  { %661 = vmatpush.bf16.msrb.mxu3 %v1101_v60  ;;  %840 = vmatpush.bf16.msra.mxu1 %v1279_v35 }
  0xb0   :  { %649 = vmatpush.bf16.msrb.mxu2 %v1029_v7  ;;  %v1266_v7 = vld [vmem:[%s1495_s6 + $0x10] sm:$0xff] }
  0xb1   :  { %829 = vmatpush.bf16.msra.mxu0 %v1268_v3 }
  0xb3   :  { %662 = vmatpush.bf16.msrb.mxu3 %v1093_v8  ;;  %841 = vmatpush.bf16.msra.mxu1 %v1278_v40  ;;  %v1274_v8 = vld [vmem:[%s1495_s6 + $0x50] sm:$0xff] }
  0xb4   :  { %650 = vmatpush.bf16.msrb.mxu2 %v1021_v17  ;;  %v671_v17 = vperm.slane %v1422_v59, 6 }
  0xb5   :  { %830 = vmatpush.bf16.msra.mxu0 %v1267_v5 }
  0xb6   :  { %v675_v23 = vperm.slane %v671_v17, 2 }
  0xb7   :  { %663 = vmatpush.bf16.msrb.mxu3 %v1085_v20  ;;  %842 = vmatpush.bf16.msra.mxu1 %v1277_v45 }
  0xb8   :  { %651 = vmatpush.bf16.msrb.mxu2 %v1013_v29 }
  0xb9   :  { %831 = vmatpush.bf16.msra.mxu0 %v1266_v7 }
  0xbb   :  { %664 = vmatpush.bf16.msrb.mxu3 %v1077_v32  ;;  %843 = vmatpush.bf16.msra.mxu1 %v1276_v4 }
  0xbd   :  { %832 = vmatpush.bf16.msra.mxu0 %v1265_v9 }
  0xbf   :  { %844 = vmatpush.bf16.msra.mxu1 %v1275_v6 }
  0xc1   :  { %833 = vmatpush.bf16.msra.mxu0 %v1264_v11 }
  0xc3   :  { %845 = vmatpush.bf16.msra.mxu1 %v1274_v8 }
  0xc7   :  { %846 = vmatpush.bf16.msra.mxu1 %v1273_v10 }
  0xcb   :  { %847 = vmatpush.bf16.msra.mxu1 %v1272_v12 }
 0x118   :  { %v356_v38 = vpop.f32.mrf.mxu0 }
 0x119   :  { %v357_v42 = vadd.f32 %v356_v38, %v160_v36 }
 0x11b   :  { %v369_v41 = vpop.f32.mrf.mxu1 }
 0x11c   :  { %v370_v47 = vadd.f32 %v369_v41, %v357_v42  ;;  %v854_v41 = vlaneseq  ;;  %v1284_v42 = vld [vmem:[%s1497_s8] ss:$0 sm:$0xff] }
 0x11e   :  { %v330_v46 = vpop.f32.mrf.mxu2  ;;  %v374_v53 = vmax.f32 %v370_v47, 0.0 }
 0x11f   :  { %v331_v48 = vadd.f32 %v330_v46, %v159_v43  ;;  %v855_v43 = vand.u32 127, %v854_v41 }
 0x120   :  { %v358_v50 = vpop.f32.mrf.mxu0 }
 0x121   :  { %v343_v49 = vpop.f32.mrf.mxu3  ;;  %vm856_vm3 = vcmp.eq.s32.totalorder %v855_v43, 0 }
 0x122   :  { %v344_v51 = vadd.f32 %v343_v49, %v331_v48 }
 0x123   :  { %v371_v52 = vpop.f32.mrf.mxu1 }
 0x124   :  { %v373_v54 = vmax.f32 %v344_v51, 0.0 }
 0x126   :  { %v375_v55 = vpack.c.bf16 %v374_v53, %v373_v54  ;;  %v332_v56 = vpop.f32.mrf.mxu2 }
 0x128   :  { %v452_v58 = vunpack.c.l.b16 %v375_v55  ;;  %v453_v60 = vunpack.c.h.b16 %v375_v55 }
 0x129   :  { %v345_v57 = vpop.f32.mrf.mxu3 }
 0x12a   :  { %v454_v61 = vpack.c.b16 %v452_v58, %v452_v58  ;;  %v455_v62 = vpack.c.b16 %v453_v60, %v453_v60 }
 0x12c   :  { %626 = vmatmul.bf16.vlgmr.msrb.gmra.mxu0 %v454_v61  ;;  %639 = vmatmul.bf16.vlgmr.msrb.gmra.mxu1 %v455_v62 }
 0x12d   :  { %652 = vmatmul.bf16.vlgmr.msrb.gmra.mxu2 %v454_v61  ;;  %665 = vmatmul.bf16.vlgmr.msrb.gmra.mxu3 %v455_v62 }
 0x12e   :  { %v434_v63 = vpop.f32.mrf.mxu2 }
 0x131   :  { %v447_v0 = vpop.f32.mrf.mxu3 }
 0x136   :  { %v436_v1 = vpop.f32.mrf.mxu2 }
 0x139   :  { %v449_v2 = vpop.f32.mrf.mxu3 }
 0x1a9   :  { %v627_v13 = vpop.f32.mrf.mxu0  ;;  %v640_v14 = vpop.f32.mrf.mxu1 }
 0x1aa   :  { %v628_v15 = vadd.f32 %v627_v13, %v434_v63 }
 0x1ac   :  { %v641_v18 = vadd.f32 %v640_v14, %v628_v15 }
 0x1ae   :  { %v676_v26 = vadd.f32 %v674_v19, %v641_v18 }
 0x1b0   :  { %v653_v20 = vpop.f32.mrf.mxu2  ;;  %v666_v21 = vpop.f32.mrf.mxu3  ;;  %v678_v29 = vmax.f32 %v676_v26, 0.0 }
 0x1b1   :  { %v654_v22 = vadd.f32 %v653_v20, %v447_v0  ;;  %v629_v24 = vpop.f32.mrf.mxu0  ;;  %v642_v25 = vpop.f32.mrf.mxu1 }
 0x1b3   :  { %v667_v27 = vadd.f32 %v666_v21, %v654_v22 }
 0x1b5   :  { %v677_v28 = vadd.f32 %v675_v23, %v667_v27 }
 0x1b7   :  { %v679_v30 = vmax.f32 %v677_v28, 0.0 }
 0x1b8   :  { %v655_v31 = vpop.f32.mrf.mxu2  ;;  %v668_v32 = vpop.f32.mrf.mxu3 }
 0x1b9   :  { %v680_v33 = vpack.c.bf16 %v679_v30, %v678_v29 }
 0x1bb   :  { %v682_v34 = vunpack.c.l.b16 %v680_v33  ;;  %v683_v35 = vunpack.c.h.b16 %v680_v33 }
 0x1bd   :  { %v684_v36 = vpack.c.b16 %v682_v34, %v682_v34  ;;  %v685_v59 = vpack.c.b16 %v683_v35, %v683_v35 }
 0x1bf   :  { %v688_v37 = vsel %vm418_vm1, %v454_v61, %v684_v36  ;;  %v692_v38 = vsel %vm418_vm1, %v455_v62, %v685_v59 }
 0x1c0   :  { %834 = vmatmul.bf16.vlgmr.msra.gmra.mxu0 %v688_v37  ;;  %848 = vmatmul.bf16.vlgmr.msra.gmra.mxu1 %v692_v38 }
 0x23d   :  { %v835_v39 = vpop.f32.mrf.mxu0  ;;  %v849_v40 = vpop.f32.mrf.mxu1 }
 0x23e   :  { %v836_v44 = vadd.f32 %v1284_v42, %v835_v39 }
 0x240   :  { %v850_v48 = vadd.f32 %v849_v40, %v836_v44 }
 0x245   :  { %v837_v45 = vpop.f32.mrf.mxu0  ;;  %v851_v47 = vpop.f32.mrf.mxu1 }
 0x246   :  { %v838_v46 = vadd.f32 %v1284_v42, %v837_v45 }
 0x248   :  { %v852_v49 = vadd.f32 %v851_v47, %v838_v46 }
 0x24a   :  { %v857_v50 = vsel %vm856_vm3, %v850_v48, %v852_v49 }
 0x24b   :  { %859 = vst.msk [vmem:[%s1498_s9] sm:$0xff] %vm858_vm4, %v857_v50 }
 0x24c   :  { %864 = vsyncpa [#allocation3], 1 }
 0x24d   :  { %865 = vsyncpa [#allocation5], 1 }

</bundles_post_ra>
